<compile_context>
chip_gen: v5e
topology: v5e:2x2
jax: 0.10.0
libtpu: 0.0.40
codegen_flags: <defaults>
</compile_context>

<pallas_src>
import functools

import jax
import jax.numpy as jnp
import numpy as np
from jax import lax
from jax.experimental import pallas as pl
from jax.experimental.pallas import tpu as pltpu


def _cross_entropy_kernel(logits_ref, tgt_ref, out_ref, *,
                          weight_0, label_smoothing: float, n_classes: int,
                          n_rows: int, block_n: int):
    x = logits_ref[...].astype(jnp.float32)            # (TN, C)
    t = tgt_ref[...]                                    # (TN, 1) int32

    # Validity mask from the global row index: handles the partial last block
    # without any wrapper-side padding of logits or target.  The mask is
    # applied to the *products* (jnp.where selects, it does not multiply), so
    # garbage / NaN / Inf in out-of-bounds rows cannot propagate.
    row = lax.broadcasted_iota(jnp.int32, (x.shape[0], 1), 0)
    valid = (pl.program_id(0) * block_n + row) < n_rows  # (TN, 1) bool

    # Numerically stable log-softmax pieces over the class (lane) dim.
    m = jnp.max(x, axis=-1, keepdims=True)               # (TN, 1)
    shifted = x - m                                        # (TN, C)
    lse = jnp.log(jnp.sum(jnp.exp(shifted), axis=-1, keepdims=True))  # (TN, 1)

    # -logp at the target class = lse - shifted[target].
    cls = lax.broadcasted_iota(jnp.int32, x.shape, 1)      # (TN, C)
    onehot = cls == t
    shifted_t = jnp.sum(jnp.where(onehot, shifted, 0.0), axis=-1, keepdims=True)
    nll = lse - shifted_t                                  # (TN, 1)

    # w[target] computed directly from the index (no (TN,C) select + reduce).
    if weight_0 is not None:
        w_t = jnp.where(t == 0, jnp.float32(weight_0), jnp.float32(1.0))
    else:
        w_t = jnp.ones_like(nll)

    s0 = jnp.sum(jnp.where(valid, w_t, 0.0))               # sum_i w[t_i]
    s1 = jnp.sum(jnp.where(valid, w_t * nll, 0.0))         # sum_i w[t_i]*nll_i

    if label_smoothing > 0.0:
        # sum_c logp = sum_c shifted - C*lse  (reuses already-computed terms).
        # NOTE: if profiling ever shows this kernel XLU-bound rather than
        # HBM-bound (possible on v7x), these lane sums can be moved to the
        # idle MXU via jnp.dot(shifted, ones((C, 1))).
        sum_logp = (jnp.sum(shifted, axis=-1, keepdims=True)
                    - jnp.float32(n_classes) * lse)         # (TN, 1)
        if weight_0 is not None:
            # sum_c w[c]*logp = sum_c logp + (w0 - 1) * logp[:, 0]
            logp0 = shifted[:, 0:1] - lse
            sum_wlogp = sum_logp + (jnp.float32(weight_0) - 1.0) * logp0
        else:
            sum_wlogp = sum_logp
        s2 = jnp.sum(jnp.where(valid, -sum_wlogp, 0.0))
    else:
        s2 = jnp.float32(0.0)

    # Lane-dense partials slab: the three sums live at (sublane 0, lanes 0..2).
    lane = lax.broadcasted_iota(jnp.int32, (1, 8, 128), 2)
    sub = lax.broadcasted_iota(jnp.int32, (1, 8, 128), 1)
    out_ref[...] = (jnp.where((sub == 0) & (lane == 0), s0, 0.0)
                    + jnp.where((sub == 0) & (lane == 1), s1, 0.0)
                    + jnp.where((sub == 0) & (lane == 2), s2, 0.0))


def _round_up(x: int, m: int) -> int:
    return ((x + m - 1) // m) * m


def _sublane_multiple(itemsize: int) -> int:
    # 8 rows/sublane-tile for 32-bit, 16 for bf16/f16, 32 for 8-bit dtypes.
    return max(8, 32 // max(1, itemsize))


def _vmem_limit_bytes() -> int:
    """Generation-aware scoped-VMEM limit: ~half of physical, capped at 64 MiB.

    v7x (64 MiB physical) -> 32 MiB; v5e/v6e (128 MiB) -> 64 MiB.
    """
    cap = None
    if hasattr(pltpu, "get_tpu_info"):
        try:
            cap = getattr(pltpu.get_tpu_info(), "vmem_capacity_bytes", None)
        except Exception:
            cap = None
    if not cap:
        cap = 64 * 1024 * 1024          # assume the smallest (v7x) if query fails
    return int(min(cap // 2, 64 * 1024 * 1024))


def _choose_block_n(n_rows: int, n_classes: int, itemsize: int,
                    vmem_limit: int) -> int:
    """Row tile sized by bytes against the VMEM budget (no fixed row cap)."""
    sub = _sublane_multiple(itemsize)
    usable = (vmem_limit * 3) // 4       # headroom for out buffers / scratch
    # Per-row double-buffered VMEM cost: logits row + int32 target row that is
    # lane-padded to 128 in VMEM (128 * 4 bytes/row, NOT 4 bytes/row).
    per_row = 2 * (n_classes * itemsize + 128 * 4)
    rows = max(sub, usable // per_row)
    # Keep >= 2 grid blocks whenever N allows, so the "parallel" grid axis
    # shards across both TensorCores on v7x (harmless on v5e/v6e).
    rows = min(rows, _round_up(-(-n_rows // 2), sub))
    rows = max(sub, (rows // sub) * sub)
    return int(rows)


def cross_entropy(logits, target, *, weight_0=None, label_smoothing=0.0,
                  block_n=None):
    """Pallas equivalent of CrossEntropy(weight_0, label_smoothing)(input, target)."""
    N, C = logits.shape
    itemsize = jnp.dtype(logits.dtype).itemsize
    vmem_limit = _vmem_limit_bytes()
    if block_n is None:
        block_n = _choose_block_n(N, C, itemsize, vmem_limit)

    num_blocks = pl.cdiv(N, block_n)

    # Only the tiny target array is reshaped; logits are streamed as-is
    # (the partial last block is masked inside the kernel by row index).
    tgt = target.astype(jnp.int32).reshape(N, 1)

    kernel = functools.partial(
        _cross_entropy_kernel,
        weight_0=None if weight_0 is None else float(weight_0),
        label_smoothing=float(label_smoothing),
        n_classes=C,
        n_rows=N,
        block_n=block_n,
    )

    cost = pl.CostEstimate(
        flops=int(8 * N * C),
        transcendentals=int(N * C),
        bytes_accessed=int(N * C * itemsize + N * 4 + num_blocks * 8 * 128 * 4),
    )

    # NOTE: for vocab-scale C where one row-tile no longer fits VMEM, a second
    # grid axis over C-chunks with an online logsumexp would bound the tile
    # footprint; not needed for the class counts this module is used with.
    partials = pl.pallas_call(
        kernel,
        out_shape=jax.ShapeDtypeStruct((num_blocks, 8, 128), jnp.float32),
        grid_spec=pltpu.PrefetchScalarGridSpec(
            num_scalar_prefetch=0,
            grid=(num_blocks,),
            in_specs=[
                pl.BlockSpec((block_n, C), lambda i: (i, 0)),   # logits tile
                pl.BlockSpec((block_n, 1), lambda i: (i, 0)),   # target tile
            ],
            out_specs=pl.BlockSpec((1, 8, 128), lambda i: (i, 0, 0)),
        ),
        compiler_params=pltpu.CompilerParams(
            dimension_semantics=("parallel",),      # independent per-block partials
            vmem_limit_bytes=vmem_limit,
        ),
        cost_estimate=cost,
    )(logits, tgt)

    totals = jnp.sum(partials, axis=(0, 1))          # (128,)
    sum_w = totals[0]
    nll_mean = totals[1] / sum_w
    eps = float(label_smoothing)
    if eps > 0.0:
        smooth_mean = totals[2] / sum_w
        return (1.0 - eps) * nll_mean + (eps / C) * smooth_mean
    return nll_mean


def _reference_cross_entropy(logits, target, weight_0, label_smoothing):
    """Pure-JAX reference matching torch.nn.functional.cross_entropy."""
    N, C = logits.shape
    if weight_0 is not None:
        weight = jnp.ones((C,), jnp.float32).at[0].set(jnp.float32(weight_0))
    else:
        weight = jnp.ones((C,), jnp.float32)
    logp = jax.nn.log_softmax(logits.astype(jnp.float32), axis=-1)
    nll_i = -jnp.take_along_axis(logp, target[:, None], axis=-1)[:, 0]
    w_t = weight[target]
    smooth_i = -jnp.sum(weight[None, :] * logp, axis=-1)
    nll_mean = jnp.sum(w_t * nll_i) / jnp.sum(w_t)
    smooth_mean = jnp.sum(smooth_i) / jnp.sum(w_t)
    return ((1.0 - label_smoothing) * nll_mean
            + (label_smoothing / C) * smooth_mean)


if __name__ == "__main__":
    # Module "parameters" (from __init__), set deterministically in-script.
    WEIGHT_0 = 0.3
    LABEL_SMOOTHING = 0.1

    N, C = 64, 128
    key = jax.random.PRNGKey(0)
    k_logits, k_target = jax.random.split(key)
    logits = jax.random.normal(k_logits, (N, C), dtype=jnp.float32)
    target = jax.random.randint(k_target, (N,), 0, C, dtype=jnp.int32)

    # 1) weighted + label-smoothed path.
    loss = cross_entropy(logits, target, weight_0=WEIGHT_0,
                         label_smoothing=LABEL_SMOOTHING)
    loss = jax.block_until_ready(loss)
    ref = _reference_cross_entropy(logits, target, WEIGHT_0, LABEL_SMOOTHING)
    np.testing.assert_allclose(np.asarray(loss), np.asarray(ref),
                               rtol=1e-5, atol=1e-5)

    # 2) plain CE (weight_0=None, eps=0) path.
    loss2 = cross_entropy(logits, target, weight_0=None, label_smoothing=0.0)
    loss2 = jax.block_until_ready(loss2)
    ref2 = _reference_cross_entropy(logits, target, None, 0.0)
    np.testing.assert_allclose(np.asarray(loss2), np.asarray(ref2),
                               rtol=1e-5, atol=1e-5)

    # 3) batch not divisible by the row tile (exercises the unpadded partial
    #    last block + in-kernel row masking).
    N3 = 50
    logits3 = jax.random.normal(jax.random.PRNGKey(1), (N3, C), jnp.float32)
    target3 = jax.random.randint(jax.random.PRNGKey(2), (N3,), 0, C, jnp.int32)
    loss3 = cross_entropy(logits3, target3, weight_0=WEIGHT_0,
                          label_smoothing=LABEL_SMOOTHING)
    loss3 = jax.block_until_ready(loss3)
    ref3 = _reference_cross_entropy(logits3, target3, WEIGHT_0, LABEL_SMOOTHING)
    np.testing.assert_allclose(np.asarray(loss3), np.asarray(ref3),
                               rtol=1e-5, atol=1e-5)

    # 4) bf16 logits (exercises dtype-aware sublane rounding); both kernel and
    #    reference upcast to f32 internally, so results should match tightly.
    N4 = 48
    logits4 = jax.random.normal(jax.random.PRNGKey(3), (N4, C),
                                jnp.float32).astype(jnp.bfloat16)
    target4 = jax.random.randint(jax.random.PRNGKey(4), (N4,), 0, C, jnp.int32)
    loss4 = cross_entropy(logits4, target4, weight_0=WEIGHT_0,
                          label_smoothing=LABEL_SMOOTHING)
    loss4 = jax.block_until_ready(loss4)
    ref4 = _reference_cross_entropy(logits4, target4, WEIGHT_0, LABEL_SMOOTHING)
    np.testing.assert_allclose(np.asarray(loss4), np.asarray(ref4),
                               rtol=1e-4, atol=1e-4)

    print("KERNEL_OK")
</pallas_src>

<mosaic_0001>
module attributes {stable_mosaic.version = 11 : i64} {
  func.func @_cross_entropy_kernel(%arg0: i32, %arg1: memref<32x128xf32, #tpu.memory_space<vmem>>, %arg2: memref<32x1xi32, #tpu.memory_space<vmem>>, %arg3: memref<1x8x128xf32, #tpu.memory_space<vmem>>) attributes {dimension_semantics = [#tpu.dimension_semantics<parallel>], iteration_bounds = array<i64: 2>, scalar_prefetch = 0 : i64, scratch_operands = 0 : i64, tpu.core_type = #tpu.core_type<tc>, window_params = [{transform_indices = @transform_0, window_bounds = array<i64: 32, 128>}, {transform_indices = @transform_1, window_bounds = array<i64: 32, 1>}, {transform_indices = @transform_2, window_bounds = array<i64: 1, 8, 128>}]} {
    %c0 = arith.constant 0 : index
    %c0_0 = arith.constant 0 : index
    %0 = vector.load %arg1[%c0, %c0_0] : memref<32x128xf32, #tpu.memory_space<vmem>>, vector<32x128xf32>
    %c0_1 = arith.constant 0 : index
    %c0_2 = arith.constant 0 : index
    %1 = vector.load %arg2[%c0_1, %c0_2] : memref<32x1xi32, #tpu.memory_space<vmem>>, vector<32x1xi32>
    %2 = tpu.iota {dimensions = array<i32: 0>} : vector<32x1xi32>
    %c32_i32 = arith.constant 32 : i32
    %3 = arith.muli %arg0, %c32_i32 : i32
    %4 = vector.broadcast %3 : i32 to vector<32x1xi32>
    %5 = arith.addi %4, %2 : vector<32x1xi32>
    %c64_i32 = arith.constant 64 : i32
    %6 = vector.broadcast %c64_i32 : i32 to vector<32x1xi32>
    %7 = arith.cmpi slt, %5, %6 : vector<32x1xi32>
    %cst = arith.constant dense<0xFF800000> : vector<32xf32>
    %8 = vector.multi_reduction <maximumf>, %0, %cst [1] : vector<32x128xf32> to vector<32xf32>
    %9 = vector.shape_cast %8 : vector<32xf32> to vector<32x1xf32>
    %10 = vector.broadcast %9 : vector<32x1xf32> to vector<32x128xf32>
    %11 = arith.subf %0, %10 : vector<32x128xf32>
    %12 = math.exp %11 : vector<32x128xf32>
    %cst_3 = arith.constant dense<0.000000e+00> : vector<32xf32>
    %13 = vector.multi_reduction <add>, %12, %cst_3 [1] : vector<32x128xf32> to vector<32xf32>
    %14 = vector.shape_cast %13 : vector<32xf32> to vector<32x1xf32>
    %15 = math.log %14 : vector<32x1xf32>
    %16 = tpu.iota {dimensions = array<i32: 1>} : vector<32x128xi32>
    %17 = vector.broadcast %1 : vector<32x1xi32> to vector<32x128xi32>
    %18 = arith.cmpi eq, %16, %17 : vector<32x128xi32>
    %cst_4 = arith.constant 0.000000e+00 : f32
    %19 = vector.broadcast %cst_4 : f32 to vector<32x128xf32>
    %20 = arith.select %18, %11, %19 : vector<32x128xi1>, vector<32x128xf32>
    %cst_5 = arith.constant dense<0.000000e+00> : vector<32xf32>
    %21 = vector.multi_reduction <add>, %20, %cst_5 [1] : vector<32x128xf32> to vector<32xf32>
    %22 = vector.shape_cast %21 : vector<32xf32> to vector<32x1xf32>
    %23 = arith.subf %15, %22 : vector<32x1xf32>
    %c0_i32 = arith.constant 0 : i32
    %24 = vector.broadcast %c0_i32 : i32 to vector<32x1xi32>
    %25 = arith.cmpi eq, %1, %24 : vector<32x1xi32>
    %cst_6 = arith.constant 3.000000e-01 : f32
    %cst_7 = arith.constant 1.000000e+00 : f32
    %26 = vector.broadcast %cst_6 : f32 to vector<32x1xf32>
    %27 = vector.broadcast %cst_7 : f32 to vector<32x1xf32>
    %28 = arith.select %25, %26, %27 : vector<32x1xi1>, vector<32x1xf32>
    %cst_8 = arith.constant 0.000000e+00 : f32
    %29 = vector.broadcast %cst_8 : f32 to vector<32x1xf32>
    %30 = arith.select %7, %28, %29 : vector<32x1xi1>, vector<32x1xf32>
    %31 = vector.shape_cast %30 : vector<32x1xf32> to vector<1x32x1xf32>
    %cst_9 = arith.constant dense<0.000000e+00> : vector<1xf32>
    %32 = vector.multi_reduction <add>, %31, %cst_9 [1, 2] : vector<1x32x1xf32> to vector<1xf32>
    %33 = vector.shape_cast %32 : vector<1xf32> to vector<1x1x1xf32>
    %34 = vector.extract %33[0, 0, 0] : f32 from vector<1x1x1xf32>
    %35 = arith.mulf %28, %23 : vector<32x1xf32>
    %cst_10 = arith.constant 0.000000e+00 : f32
    %36 = vector.broadcast %cst_10 : f32 to vector<32x1xf32>
    %37 = arith.select %7, %35, %36 : vector<32x1xi1>, vector<32x1xf32>
    %38 = vector.shape_cast %37 : vector<32x1xf32> to vector<1x32x1xf32>
    %cst_11 = arith.constant dense<0.000000e+00> : vector<1xf32>
    %39 = vector.multi_reduction <add>, %38, %cst_11 [1, 2] : vector<1x32x1xf32> to vector<1xf32>
    %40 = vector.shape_cast %39 : vector<1xf32> to vector<1x1x1xf32>
    %41 = vector.extract %40[0, 0, 0] : f32 from vector<1x1x1xf32>
    %cst_12 = arith.constant dense<0.000000e+00> : vector<32xf32>
    %42 = vector.multi_reduction <add>, %11, %cst_12 [1] : vector<32x128xf32> to vector<32xf32>
    %43 = vector.shape_cast %42 : vector<32xf32> to vector<32x1xf32>
    %cst_13 = arith.constant 1.280000e+02 : f32
    %44 = vector.broadcast %cst_13 : f32 to vector<32x1xf32>
    %45 = arith.mulf %44, %15 : vector<32x1xf32>
    %46 = arith.subf %43, %45 : vector<32x1xf32>
    %47 = vector.extract_strided_slice %11 {offsets = [0, 0], sizes = [32, 1], strides = [1, 1]} : vector<32x128xf32> to vector<32x1xf32>
    %48 = arith.subf %47, %15 : vector<32x1xf32>
    %cst_14 = arith.constant 3.000000e-01 : f32
    %cst_15 = arith.constant 1.000000e+00 : f32
    %49 = arith.subf %cst_14, %cst_15 : f32
    %50 = vector.broadcast %49 : f32 to vector<32x1xf32>
    %51 = arith.mulf %50, %48 : vector<32x1xf32>
    %52 = arith.addf %46, %51 : vector<32x1xf32>
    %cst_16 = arith.constant 0.000000e+00 : f32
    %53 = vector.broadcast %cst_16 : f32 to vector<32x1xf32>
    %54 = arith.subf %53, %52 : vector<32x1xf32>
    %cst_17 = arith.constant 0.000000e+00 : f32
    %55 = vector.broadcast %cst_17 : f32 to vector<32x1xf32>
    %56 = arith.select %7, %54, %55 : vector<32x1xi1>, vector<32x1xf32>
    %57 = vector.shape_cast %56 : vector<32x1xf32> to vector<1x32x1xf32>
    %cst_18 = arith.constant dense<0.000000e+00> : vector<1xf32>
    %58 = vector.multi_reduction <add>, %57, %cst_18 [1, 2] : vector<1x32x1xf32> to vector<1xf32>
    %59 = vector.shape_cast %58 : vector<1xf32> to vector<1x1x1xf32>
    %60 = vector.extract %59[0, 0, 0] : f32 from vector<1x1x1xf32>
    %61 = tpu.iota {dimensions = array<i32: 2>} : vector<1x8x128xi32>
    %62 = tpu.iota {dimensions = array<i32: 1>} : vector<1x8x128xi32>
    %c0_i32_19 = arith.constant 0 : i32
    %63 = vector.broadcast %c0_i32_19 : i32 to vector<1x8x128xi32>
    %64 = arith.cmpi eq, %62, %63 : vector<1x8x128xi32>
    %c0_i32_20 = arith.constant 0 : i32
    %65 = vector.broadcast %c0_i32_20 : i32 to vector<1x8x128xi32>
    %66 = arith.cmpi eq, %61, %65 : vector<1x8x128xi32>
    %67 = arith.andi %64, %66 : vector<1x8x128xi1>
    %cst_21 = arith.constant 0.000000e+00 : f32
    %68 = vector.broadcast %34 : f32 to vector<1x8x128xf32>
    %69 = vector.broadcast %cst_21 : f32 to vector<1x8x128xf32>
    %70 = arith.select %67, %68, %69 : vector<1x8x128xi1>, vector<1x8x128xf32>
    %c0_i32_22 = arith.constant 0 : i32
    %71 = vector.broadcast %c0_i32_22 : i32 to vector<1x8x128xi32>
    %72 = arith.cmpi eq, %62, %71 : vector<1x8x128xi32>
    %c1_i32 = arith.constant 1 : i32
    %73 = vector.broadcast %c1_i32 : i32 to vector<1x8x128xi32>
    %74 = arith.cmpi eq, %61, %73 : vector<1x8x128xi32>
    %75 = arith.andi %72, %74 : vector<1x8x128xi1>
    %cst_23 = arith.constant 0.000000e+00 : f32
    %76 = vector.broadcast %41 : f32 to vector<1x8x128xf32>
    %77 = vector.broadcast %cst_23 : f32 to vector<1x8x128xf32>
    %78 = arith.select %75, %76, %77 : vector<1x8x128xi1>, vector<1x8x128xf32>
    %79 = arith.addf %70, %78 : vector<1x8x128xf32>
    %c0_i32_24 = arith.constant 0 : i32
    %80 = vector.broadcast %c0_i32_24 : i32 to vector<1x8x128xi32>
    %81 = arith.cmpi eq, %62, %80 : vector<1x8x128xi32>
    %c2_i32 = arith.constant 2 : i32
    %82 = vector.broadcast %c2_i32 : i32 to vector<1x8x128xi32>
    %83 = arith.cmpi eq, %61, %82 : vector<1x8x128xi32>
    %84 = arith.andi %81, %83 : vector<1x8x128xi1>
    %cst_25 = arith.constant 0.000000e+00 : f32
    %85 = vector.broadcast %60 : f32 to vector<1x8x128xf32>
    %86 = vector.broadcast %cst_25 : f32 to vector<1x8x128xf32>
    %87 = arith.select %84, %85, %86 : vector<1x8x128xi1>, vector<1x8x128xf32>
    %88 = arith.addf %79, %87 : vector<1x8x128xf32>
    %c0_26 = arith.constant 0 : index
    %c0_27 = arith.constant 0 : index
    %c0_28 = arith.constant 0 : index
    %89 = vector.load %arg3[%c0_26, %c0_27, %c0_28] : memref<1x8x128xf32, #tpu.memory_space<vmem>>, vector<1x8x128xf32>
    tpu.vector_store %arg3[%c0_26, %c0_27, %c0_28], %88 {strides = array<i32>} : memref<1x8x128xf32, #tpu.memory_space<vmem>>, vector<1x8x128xf32>,
    return
  }
  func.func @transform_0(%arg0: i32) -> (i32, i32) {
    %c0_i32 = arith.constant 0 : i32
    %c0_i32_0 = arith.constant 0 : i32
    return %arg0, %c0_i32 : i32, i32
  }
  func.func @transform_1(%arg0: i32) -> (i32, i32) {
    %c0_i32 = arith.constant 0 : i32
    %c0_i32_0 = arith.constant 0 : i32
    return %arg0, %c0_i32 : i32, i32
  }
  func.func @transform_2(%arg0: i32) -> (i32, i32, i32) {
    %c0_i32 = arith.constant 0 : i32
    %c0_i32_0 = arith.constant 0 : i32
    %c0_i32_1 = arith.constant 0 : i32
    return %arg0, %c0_i32, %c0_i32_0 : i32, i32, i32
  }
}

</mosaic_0001>

<bundles_post_ra>
// kernel: tpu_custom_call.1
= control target key start
LH: loop header
LB: loop body
LE: loop exit
PB: predicated region body
PF: predicated region fallthrough
CT: control target
= control target key end

     0   :  { %7 = vsyncpa [#allocation3], 0  ;;  %s824_s0 = inlined_call_operand.vmem [shape: f32[64,128], index: 0, kind: input, shape index: {}]   ;;  %s825_s1 = inlined_call_operand.vmem [shape: s32[64,1], index: 1, kind: input, shape index: {}]   ;;  %s826_s2 = inlined_call_operand.hbm [shape: f32[2,8,128], index: 2, kind: output, shape index: {}]  }
   0x1   :  { %9 = vsyncpa [#allocation3 + $0x1], 0  ;;  %s628_s9 = smov 0   ;;  %s630_s10 = smov 0  }
   0x2   :  { %s632_s11 = smov 0   ;;  %s634_s12 = smov 0  }
   0x3 LB: > { %s649_s13 = sadd.s32 4294967295, %s609_s12   ;;  %s467_s14 = sadd.s32 4294967294, %s609_s12   ;;  %s609_s12 = sphi %s634_s12, %s832_s12   ;;  %s605_s11 = sphi %s632_s11, %s831_s11   ;;  %s601_s10 = sphi %s630_s10, %s830_s10   ;;  %s597_s9 = sphi %s628_s9, %s829_s9  }
   0x4   : > { %s653_s15 = sadd.s32 1, %s609_s12   ;;  %s74_s16 = sadd.s32 1, %s605_s11 }
   0x5   : > { %s71_s17 = ssub.s32 %s609_s12, %s653_s15  ;;  %p84_p0 = scmp.ne.s32.totalorder %s605_s11, %s601_s10 }
   0x6   : > { %p72_p1 = scmp.eq.s32.totalorder %s71_s17, 0  ;;  %p85_p2 = scmp.eq.s32.totalorder %s649_s13, 1 }
   0x7   : > { %p90_p3 = scmp.ne.s32.totalorder %s601_s10, %s597_s9  ;;  %p91_p4 = scmp.eq.s32.totalorder %s467_s14, 1 }
   0x8   : > { %s664_s18 = scalar_select %p72_p1, %s605_s11, %s74_s16  }
   0x9   : > { %p666_p5 = por %p85_p2, %p84_p0  ;;  %p670_p6 = por %p91_p4, %p90_p3 }
   0xa   : > { %p470_p7 = scmp.ge.s32.totalorder %s609_s12, 1  ;;  %p127_p8 = scmp.lt.s32.totalorder %s609_s12, 3 }
   0xc   : > { %p128_p9 = pnand %p470_p7, %p127_p8 }
   0xd   : > { %s472_s21 = sshll.u32 (!%p128_p9), %s649_s13, 2  ;;  %s476_s29 = sshll.u32 (!%p128_p9), %s649_s13, 5 }
   0xe   : > { %131 = sbr.rel (%p128_p9) target bundleno = 510 (0x1fe), region = 28  ;;  %p155_p10 = scmp.lt.s32.totalorder (!%p128_p9), %s472_s21, 7 }
   0xf   : > { %s151_s30 = sand.u32 (!%p128_p9), 1, %s601_s10   ;;  %s478_s5 = sshll.u32 (!%p128_p9), %s649_s13, 3 }
  0x10   : > { %s471_s3 = sshll.u32 (!%p128_p9), %s151_s30, 3  ;;  %s391_s8 = scalar_lea.hbm (!%p128_p9), %s826_s2, %s478_s5 }
  0x11   : > { %s153_s17 = scalar_lea.vmem (!%p128_p9), [#allocation2], %s471_s3  ;;  %s395_s13 = sshll.u32 (!%p128_p9), %s391_s8, 4  ;;  %s396_s13 = int_to_ptr.hbm [resolvable:$true] %s395_s13 }
  0x12   : > { %s561_s23 = sshra.s32 (!%p128_p9), %s396_s13, 4  ;;  %s567_s27 = scalar_lea.hbm (!%p128_p9), %s826_s2, 16  ;;  %s562_s23 = int_to_ptr.hbm [resolvable:$true] %s561_s23 }
  0x13   : > { %v611_v0 = vmov 0   ;;  %s834_s21 = smov (!%p155_p10, %s472_s21), 7  ;;  %v174_v16 = vlaneseq  ;;  %v180_v37 = vstv %s476_s29  ;;  %v612_v42 = vmov 1.0   ;;  %s563_s24 = scalar_lea.hbm %s562_s23, 8 }
  0x14   : > { %528 = vset.pattern.permute.xlu2 %v611_v0  ;;  %529 = vset.pattern.permute.xlu0 %v611_v0  ;;  %s473_s22 = sshll.u32 %s834_s21, 3  ;;  %vm271_vm9 = vcmask 7168   ;;  %s393_s21 = sshll.u32 %s153_s17, 4  ;;  %s394_s21 = int_to_ptr.vmem [resolvable:$true] %s393_s21 }
  0x15   : > { %530 = vset.pattern.permute.xlu1 %v611_v0  ;;  %s158_s25 = scalar_lea.vmem %s824_s0, %s473_s22  ;;  %s164_s28 = scalar_lea.vmem %s825_s1, %s473_s22  ;;  %v704_v21 = vand.u32 127, %v174_v16  ;;  %v721_v35 = vshrl.u32 %v174_v16, 7 }
  0x16   : > { %v168_v1 = vld [vmem:[%s158_s25 + $0x10] sm:$0xff]  ;;  %v166_v2 = vld [vmem:[%s158_s25] sm:$0xff]  ;;  %v167_v4 = vld [vmem:[%s158_s25 + $0x8] sm:$0xff]  ;;  %s381_s22 = scalar_lea.sflag [#allocation3], %s151_s30  ;;  %p564_p11 = scmp.ne.s32.totalorder %s562_s23, %s563_s24 }
  0x17   : > { %193 = vmax.xlane.f32.xlu1 %v168_v1  ;;  %189 = vmax.xlane.f32.xlu0 %v166_v2  ;;  %v683_v3 = vld [vmem:[%s164_s28] sm:$0xff]  ;;  %v169_v5 = vld [vmem:[%s158_s25 + $0x18] sm:$0xff]  ;;  %v686_v6 = vld [vmem:[%s164_s28 + $0x8] sm:$0xff]  ;;  %v176_v36 = vadd.s32 8, %v721_v35  ;;  %v726_v39 = vadd.s32 %v180_v37, %v721_v35  ;;  %v177_v41 = vadd.s32 16, %v721_v35  ;;  %v178_v56 = vadd.s32 24, %v721_v35  ;;  %p568_p0 = scmp.lt.s32.totalorder %s562_s23, %s826_s2  ;;  %p569_p1 = scmp.lt.s32.totalorder %s567_s27, %s563_s24 }
  0x18   : > { %228 = vperm.xlu2 %528, %v683_v3   ;;  %v689_v7 = vld [vmem:[%s164_s28 + $0x10] sm:$0xff]  ;;  %v692_v8 = vld [vmem:[%s164_s28 + $0x18] sm:$0xff]  ;;  %vm259_vm4 = vcmp.eq.s32.totalorder %v683_v3, 0  ;;  %vm260_vm5 = vcmp.eq.s32.totalorder %v686_v6, 0  ;;  %vm364_vm13 = vcmp.eq.s32.totalorder %v721_v35, 0  ;;  %vm365_vm14 = vcmp.eq.s32.totalorder %v704_v21, 0  ;;  %p565_p12 = pnand %p564_p11, %p666_p5 }
  0x19   : > { %v728_v40 = vadd.s32 %v180_v37, %v176_v36  ;;  %vm185_vm6 = vcmp.lt.s32.totalorder %v726_v39, 64  ;;  %v263_v43 = vsel %vm259_vm4, 0.3, %v612_v42  ;;  %v264_v44 = vsel %vm260_vm5, 0.3, %v612_v42  ;;  %p570_p2 = por %p569_p1, %p568_p0 }
  0x1a   : > { %v267_v46 = vsel %vm185_vm6, %v263_v43, 0.0  ;;  %v739_v49 = vadd.s32 %v180_v37, %v177_v41  ;;  %vm261_vm8 = vcmp.eq.s32.totalorder %v689_v7, 0  ;;  %vm262_vm10 = vcmp.eq.s32.totalorder %v692_v8, 0  ;;  %p566_p13 = pneg %p565_p12 }
  0x1b   : > { %vm186_vm7 = vcmp.lt.s32.totalorder %v728_v40, 64  ;;  %v272_v52 = vsel %vm271_vm9, %v267_v46, 0.0  ;;  %v265_v55 = vsel %vm261_vm8, 0.3, %v612_v42  ;;  %v749_v58 = vsel %vm262_vm10, 0.3, %v612_v42 }
  0x1c   : > { %v268_v48 = vsel %vm186_vm7, %v264_v44, 0.0  ;;  %vm187_vm11 = vcmp.lt.s32.totalorder %v739_v49, 64  ;;  %v751_v59 = vadd.s32 %v180_v37, %v178_v56  ;;  %vm369_vm15 = vcmp.eq.s32.totalorder %v704_v21, 1  ;;  %p571_p3 = pnand %p570_p2, %p566_p13 }
  0x1d   : > { %v273_v53 = vsel %vm271_vm9, %v268_v48, 0.0  ;;  %v269_v57 = vsel %vm187_vm11, %v265_v55, 0.0 }
  0x1e   : > { %v274_v60 = vadd.f32 %v273_v53, %v272_v52  ;;  %v275_v62 = vsel %vm271_vm9, %v269_v57, 0.0  ;;  %vm188_vm12 = vcmp.lt.s32.totalorder %v751_v59, 64 }
  0x1f   : > { %191 = vmax.xlane.f32.xlu0 %v167_v4  ;;  %195 = vmax.xlane.f32.xlu1 %v169_v5 }
  0x20   : > { %231 = vperm.xlu2 %528, %v686_v6  }
  0x33   : > { %234 = vperm.xlu0 %529, %v689_v7  }
  0x38   : > { %237 = vperm.xlu1 %530, %v692_v8  }
  0x72   : > { %v229_v22 = vpop.permute.xlu2 %228 }
  0x73   : > { %vm239_vm0 = vcmp.eq.s32.totalorder %v704_v21, %v229_v22 }
  0x7a   : > { %v232_v27 = vpop.permute.xlu2 %231 }
  0x7b   : > { %vm240_vm1 = vcmp.eq.s32.totalorder %v704_v21, %v232_v27 }
  0x8a   : > { %v194_v9 = vpop.xlane.xlu1 %193  ;;  %v190_v10 = vpop.xlane.xlu0 %189 }
  0x8b   : > { %v695_v11 = vsub.f32 %v168_v1, %v194_v9  ;;  %v697_v12 = vsub.f32 %v166_v2, %v190_v10  ;;  %v276_v1 = vadd.f32 %v275_v62, %v274_v60 }
  0x8d   : > { %v205_v13 = vmul.f32 1.442695, %v695_v11  ;;  %v201_v14 = vmul.f32 1.442695, %v697_v12  ;;  %v243_v26 = vsel %vm239_vm0, %v697_v12, 0.0  ;;  %vm366_vm0 = vmand %vm364_vm13, %vm365_vm14 }
  0x8f   : > { %531 = vpow2.f32 %v205_v13 }
  0x90   : > { %533 = vpow2.f32 %v201_v14 }
  0x92   : > { %v192_v15 = vpop.xlane.xlu0 %191  ;;  %v196_v23 = vpop.xlane.xlu1 %195 }
  0x93   : > { %v701_v17 = vsub.f32 %v167_v4, %v192_v15  ;;  %v706_v24 = vsub.f32 %v169_v5, %v196_v23  ;;  %v270_v4 = vsel %vm188_vm12, %v749_v58, 0.0 }
  0x94   : > { %v277_v6 = vsel %vm271_vm9, %v270_v4, 0.0 }
  0x95   : > { %v532_v18 = vpop.eup %531  ;;  %v203_v19 = vmul.f32 1.442695, %v701_v17  ;;  %v244_v28 = vsel %vm240_vm1, %v701_v17, 0.0  ;;  %v207_v29 = vmul.f32 1.442695, %v706_v24  ;;  %v278_v7 = vadd.f32 %v277_v6, %v276_v1 }
  0x96   : > { %v534_v20 = vpop.eup %533  ;;  %213 = vadd.xlane.f32.xlu0 %v532_v18  ;;  %vm374_vm1 = vcmp.eq.s32.totalorder %v704_v21, 2 }
  0x97   : > { %209 = vadd.xlane.f32.xlu2 %v534_v20  ;;  %535 = vpow2.f32 %v203_v19 }
  0x98   : > { %537 = vpow2.f32 %v207_v29 }
  0x9d   : > { %v536_v25 = vpop.eup %535 }
  0x9e   : > { %211 = vadd.xlane.f32.xlu1 %v536_v25  ;;  %318 = vadd.xlane.f32.xlu0 %v706_v24  ;;  %v538_v30 = vpop.eup %537 }
  0x9f   : > { %247 = vadd.xlane.f32.xlu2 %v243_v26 }
  0xa5   : > { %v235_v31 = vpop.permute.xlu0 %234 }
  0xa6   : > { %314 = vadd.xlane.f32.xlu1 %v701_v17  ;;  %vm241_vm2 = vcmp.eq.s32.totalorder %v704_v21, %v235_v31 }
  0xa7   : > { %249 = vadd.xlane.f32.xlu2 %v244_v28  ;;  %v245_v32 = vsel %vm241_vm2, %v695_v11, 0.0  ;;  %vm370_vm2 = vmand %vm364_vm13, %vm369_vm15 }
  0xaa   : > { %v238_v33 = vpop.permute.xlu1 %237 }
  0xab   : > { %vm242_vm3 = vcmp.eq.s32.totalorder %v704_v21, %v238_v33 }
  0xac   : > { %v246_v34 = vsel %vm242_vm3, %v706_v24, 0.0  ;;  %vm375_vm3 = vmand %vm364_vm13, %vm374_vm1 }
  0xae   : > { %316 = vadd.xlane.f32.xlu1 %v695_v11 }
  0xaf   : > { %312 = vadd.xlane.f32.xlu2 %v697_v12 }
  0xb6   : > { %279 = vadd.xlane.f32.xlu1 %v278_v7 }
  0xb7   : > { %215 = vadd.xlane.f32.xlu2 %v538_v30 }
  0xbf   : > { %251 = vadd.xlane.f32.xlu2 %v245_v32 }
  0xc7   : > { %253 = vadd.xlane.f32.xlu2 %v246_v34 }
 0x109   : > { %v214_v2 = vpop.xlane.xlu0 %213 }
 0x10a   : > { %v210_v38 = vpop.xlane.xlu2 %209 }
 0x10b   : > { %539 = vlog2.f32 %v210_v38 }
 0x111   : > { %v540_v45 = vpop.eup %539  ;;  %v212_v47 = vpop.xlane.xlu1 %211 }
 0x112   : > { %v218_v50 = vmul.f32 0.6931472, %v540_v45  ;;  %v248_v51 = vpop.xlane.xlu2 %247  ;;  %541 = vlog2.f32 %v212_v47  ;;  %v319_v52 = vpop.xlane.xlu0 %318 }
 0x113   : > { %543 = vlog2.f32 %v214_v2 }
 0x114   : > { %v255_v54 = vsub.f32 %v218_v50, %v248_v51  ;;  %v320_v23 = vmul.f32 128.0, %v218_v50  ;;  %v328_v25 = vsub.f32 %v697_v12, %v218_v50 }
 0x116   : > { %v288_v63 = vmul.f32 %v263_v43, %v255_v54  ;;  %v332_v30 = vmul.f32 -0.7, %v328_v25 }
 0x118   : > { %v542_v61 = vpop.eup %541  ;;  %v292_v8 = vsel %vm185_vm6, %v288_v63, 0.0 }
 0x119   : > { %v220_v0 = vmul.f32 0.6931472, %v542_v61  ;;  %v315_v13 = vpop.xlane.xlu1 %314  ;;  %v296_v14 = vsel %vm271_vm9, %v292_v8, 0.0  ;;  %v544_v19 = vpop.eup %543 }
 0x11a   : > { %v250_v3 = vpop.xlane.xlu2 %249  ;;  %v222_v26 = vmul.f32 0.6931472, %v544_v19 }
 0x11b   : > { %v256_v5 = vsub.f32 %v220_v0, %v250_v3  ;;  %v321_v20 = vmul.f32 128.0, %v220_v0  ;;  %v329_v22 = vsub.f32 %v701_v17, %v220_v0 }
 0x11c   : > { %v322_v31 = vmul.f32 128.0, %v222_v26  ;;  %v330_v34 = vsub.f32 %v695_v11, %v222_v26 }
 0x11d   : > { %v289_v9 = vmul.f32 %v264_v44, %v256_v5  ;;  %v333_v28 = vmul.f32 -0.7, %v329_v22  ;;  %v325_v29 = vsub.f32 %v315_v13, %v321_v20 }
 0x11e   : > { %v334_v42 = vmul.f32 -0.7, %v330_v34 }
 0x11f   : > { %v293_v10 = vsel %vm186_vm7, %v289_v9, 0.0  ;;  %v337_v37 = vadd.f32 %v333_v28, %v325_v29 }
 0x120   : > { %v297_v15 = vsel %vm271_vm9, %v293_v10, 0.0 }
 0x121   : > { %v298_v16 = vadd.f32 %v297_v15, %v296_v14  ;;  %v317_v32 = vpop.xlane.xlu1 %316  ;;  %v341_v17 = vsub.f32 0.0, %v337_v37 }
 0x122   : > { %v313_v18 = vpop.xlane.xlu2 %312  ;;  %v326_v38 = vsub.f32 %v317_v32, %v322_v31 }
 0x123   : > { %v324_v27 = vsub.f32 %v313_v18, %v320_v23  ;;  %v345_v48 = vsel %vm186_vm7, %v341_v17, 0.0 }
 0x124   : > { %v338_v43 = vadd.f32 %v334_v42, %v326_v38  ;;  %v349_v60 = vsel %vm271_vm9, %v345_v48, 0.0 }
 0x125   : > { %v336_v33 = vadd.f32 %v332_v30, %v324_v27 }
 0x126   : > { %v342_v50 = vsub.f32 0.0, %v338_v43 }
 0x127   : > { %v340_v41 = vsub.f32 0.0, %v336_v33 }
 0x128   : > { %v346_v61 = vsel %vm187_vm11, %v342_v50, 0.0 }
 0x129   : > { %v344_v12 = vsel %vm185_vm6, %v340_v41, 0.0  ;;  %v280_v10 = vpop.xlane.xlu1 %279 }
 0x12a   : > { %v216_v36 = vpop.xlane.xlu2 %215  ;;  %v348_v53 = vsel %vm271_vm9, %v344_v12, 0.0  ;;  %v281_v13 = vrot.slane %v280_v10, 4 }
 0x12b   : > { %545 = vlog2.f32 %v216_v36  ;;  %v350_v62 = vadd.f32 %v349_v60, %v348_v53 }
 0x12c   : > { %v282_v14 = vadd.f32 %v281_v13, %v280_v10 }
 0x12e   : > { %v283_v15 = vrot.slane %v282_v14, 2 }
 0x131   : > { %v546_v44 = vpop.eup %545 }
 0x132   : > { %v224_v45 = vmul.f32 0.6931472, %v546_v44  ;;  %v252_v46 = vpop.xlane.xlu2 %251 }
 0x133   : > { %v257_v47 = vsub.f32 %v222_v26, %v252_v46 }
 0x134   : > { %v323_v11 = vmul.f32 128.0, %v224_v45  ;;  %v331_v51 = vsub.f32 %v706_v24, %v224_v45 }
 0x135   : > { %v290_v54 = vmul.f32 %v265_v55, %v257_v47  ;;  %v351_v55 = vsel %vm271_vm9, %v346_v61, 0.0 }
 0x136   : > { %v335_v56 = vmul.f32 -0.7, %v331_v51  ;;  %v327_v57 = vsub.f32 %v319_v52, %v323_v11  ;;  %v352_v4 = vadd.f32 %v351_v55, %v350_v62 }
 0x137   : > { %v294_v39 = vsel %vm187_vm11, %v290_v54, 0.0 }
 0x138   : > { %v339_v40 = vadd.f32 %v335_v56, %v327_v57  ;;  %v299_v63 = vsel %vm271_vm9, %v294_v39, 0.0 }
 0x139   : > { %v300_v0 = vadd.f32 %v299_v63, %v298_v16  ;;  %v284_v16 = vadd.f32 %v283_v15, %v282_v14 }
 0x13a   : > { %v254_v24 = vpop.xlane.xlu2 %253  ;;  %v343_v1 = vsub.f32 0.0, %v339_v40 }
 0x13b   : > { %v258_v2 = vsub.f32 %v224_v45, %v254_v24  ;;  %v285_v18 = vrot.slane %v284_v16, 1 }
 0x13c   : > { %v347_v3 = vsel %vm188_vm12, %v343_v1, 0.0 }
 0x13d   : > { %v291_v5 = vmul.f32 %v749_v58, %v258_v2  ;;  %v353_v6 = vsel %vm271_vm9, %v347_v3, 0.0  ;;  %v286_v19 = vadd.f32 %v285_v18, %v284_v16 }
 0x13e   : > { %v354_v49 = vadd.f32 %v353_v6, %v352_v4 }
 0x13f   : > { %v295_v7 = vsel %vm188_vm12, %v291_v5, 0.0  ;;  %481 = vpush %v286_v19 }
 0x140   : > { %355 = vadd.xlane.f32.xlu0 %v354_v49  ;;  %v301_v8 = vsel %vm271_vm9, %v295_v7, 0.0 }
 0x141   : > { %v302_v9 = vadd.f32 %v301_v8, %v300_v0 }
 0x143   : > { %303 = vadd.xlane.f32.xlu2 %v302_v9 }
 0x170   : > { %s482_s4 = spop %481 }
 0x171   : > { %v367_v34 = vstv %s482_s4 }
 0x172   : > { %v368_v35 = vsel %vm366_vm0, %v367_v34, 0.0 }
 0x1b3   : > { %v356_v58 = vpop.xlane.xlu0 %355 }
 0x1b4   : > { %v357_v20 = vrot.slane %v356_v58, 4 }
 0x1b6   : > { %v358_v22 = vadd.f32 %v357_v20, %v356_v58  ;;  %v304_v23 = vpop.xlane.xlu2 %303 }
 0x1b7   : > { %v305_v59 = vrot.slane %v304_v23, 4 }
 0x1b8   : > { %v359_v25 = vrot.slane %v358_v22, 2 }
 0x1b9   : > { %v306_v26 = vadd.f32 %v305_v59, %v304_v23 }
 0x1ba   : > { %v360_v27 = vadd.f32 %v359_v25, %v358_v22 }
 0x1bb   : > { %v307_v28 = vrot.slane %v306_v26, 2 }
 0x1bc   : > { %v361_v30 = vrot.slane %v360_v27, 1 }
 0x1bd   : > { %v308_v29 = vadd.f32 %v307_v28, %v306_v26 }
 0x1be   : > { %v362_v33 = vadd.f32 %v361_v30, %v360_v27 }
 0x1bf   : > { %v309_v31 = vrot.slane %v308_v29, 1 }
 0x1c1   : > { %v310_v32 = vadd.f32 %v309_v31, %v308_v29 }
 0x1c3   : > { %483 = vpush %v310_v32 }
 0x1c4   : > { %485 = vpush %v362_v33 }
 0x1f4   : > { %s484_s14 = spop %483 }
 0x1f5   : > { %v371_v36 = vstv %s484_s14  ;;  %s486_s16 = spop %485 }
 0x1f6   : > { %v372_v37 = vsel %vm370_vm2, %v371_v36, 0.0  ;;  %v376_v38 = vstv %s486_s16 }
 0x1f7   : > { %v373_v41 = vadd.f32 %v372_v37, %v368_v35  ;;  %v377_v42 = vsel %vm375_vm3, %v376_v38, 0.0 }
 0x1f9   : > { %v378_v21 = vadd.f32 %v377_v42, %v373_v41 }
 0x1fb   : > { %379 = vst [vmem:[%s153_s17] sm:$0xff] %v378_v21 }
 0x1fc   : > { %574 = shalt.err (!%p571_p3)
}
 0x1fd   : > { %487 = dma.vmem_to_hbm [thread:$0]  (%p666_p5), %s394_s21, 128, %s396_s13, %s381_s22  }
 0x1fe PF: > { %p493_p4 = scmp.ge.s32.totalorder %s609_s12, 2  ;;  %s407_s30 = sand.u32 1, %s597_s9  }
 0x1ff   : > { %s408_s3 = scalar_lea.sflag [#allocation3], %s407_s30 }
 0x200   : > { %p490_p7 = pnand %p493_p4, %p670_p6 }
 0x202   : > { %p491_p8 = pneg %p490_p7 }
 0x204   : > { %592 = dma.done.wait (%p491_p8), %s408_s3, 128  }
 0x205   : > { %594 = vsyncadd (%p491_p8), %s408_s3, 4294967168  ;;  %p12_p9 = scmp.ge.s32.totalorder %s653_s15, 4   ;;  %s829_s9 = smov %s601_s10 }
 0x206   : > { %s830_s10 = smov %s605_s11  ;;  %s831_s11 = smov %s664_s18 }
 0x207   : > { %s832_s12 = smov %s653_s15  ;;  %14 = sbr.rel (!%p12_p9) target bundleno = 3 (0x3), region = 66 }
 0x20c   :  { %414 = vsyncpa [#allocation3], 1 }
 0x20d   :  { %416 = vsyncpa [#allocation3 + $0x1], 1 }

</bundles_post_ra>
